<compile_context>
chip_gen: v5e
topology: v5e:2x2
jax: 0.10.0
libtpu: 0.0.40
codegen_flags: <defaults>
</compile_context>

<pallas_src>
import jax
import jax.numpy as jnp
from jax.experimental import pallas as pl
from jax.experimental.pallas import tpu as pltpu


def _cfc_kernel(x_ref, h_ref, ts_ref, wx_ref, whr_ref, bbb_ref,
                whd_ref, bhd_ref, out_ref):
    wdt = wx_ref.dtype

    # Backbone: two MXU matmuls on the un-concatenated inputs (avoids an HBM
    # round-trip for cat([x, hx])), fp32 accumulation, then LeCun tanh (EUP).
    z = (jnp.dot(x_ref[...].astype(wdt), wx_ref[...],
                 preferred_element_type=jnp.float32)
         + jnp.dot(h_ref[...].astype(wdt), whr_ref[...],
                   preferred_element_type=jnp.float32)
         + bbb_ref[...])
    z = 1.7159 * jnp.tanh(0.666 * z)                     # [TB, U], fp32

    # Heads: ONE lane-dense matmul producing [TB, 4H], then static lane slices.
    heads = jnp.dot(z.astype(whd_ref.dtype), whd_ref[...],
                    preferred_element_type=jnp.float32) + bhd_ref[...]

    H = out_ref.shape[-1]
    ff1 = heads[:, 0 * H:1 * H]
    ff2 = heads[:, 1 * H:2 * H]
    t_a = heads[:, 2 * H:3 * H]
    t_b = heads[:, 3 * H:4 * H]

    t1 = jnp.tanh(ff1)
    t2 = jnp.tanh(ff2)
    t_interp = jax.nn.sigmoid(t_a * ts_ref[...] + t_b)   # ts broadcasts over H

    # h = t1*(1-t) + t*t2  ==  t1 + t*(t2 - t1)
    out_ref[...] = (t1 + t_interp * (t2 - t1)).astype(out_ref.dtype)


def efficient_cfc_cell(x, hx, ts, fused_params, *, tile_b=None):
    """x: [B, F_in], hx: [B, H], ts: scalar, [B] or [B,1]. Returns (h_new, h_new)."""
    B, F_in = x.shape
    H = hx.shape[1]

    x = x.astype(jnp.float32)
    hx = hx.astype(jnp.float32)
    ts = jnp.asarray(ts, jnp.float32)
    if ts.ndim == 0:
        ts = jnp.full((B,), ts, jnp.float32)
    ts2 = jnp.reshape(ts, (B, 1))

    wx = fused_params["w_bb_x"]        # [F_in, U]
    whr = fused_params["w_bb_h"]       # [H, U]
    bbb = fused_params["b_bb"]         # [1, U]   (fp32)
    whd = fused_params["w_heads"]      # [U, 4H]
    bhd = fused_params["b_heads"]      # [1, 4H]  (fp32)

    U = wx.shape[1]
    H4 = whd.shape[1]

    # Batch tiling: full batch as one block when small, else 512-row tiles
    # (multiple of 8 sublanes) with double-buffered DMA overlap.
    if tile_b is None:
        tile_b = B if B <= 512 else 512
    grid = (pl.cdiv(B, tile_b),)

    h_new = pl.pallas_call(
        _cfc_kernel,
        out_shape=jax.ShapeDtypeStruct((B, H), jnp.float32),
        grid=grid,
        in_specs=[
            pl.BlockSpec((tile_b, F_in), lambda i: (i, 0)),   # x   (streamed)
            pl.BlockSpec((tile_b, H), lambda i: (i, 0)),      # hx  (streamed)
            pl.BlockSpec((tile_b, 1), lambda i: (i, 0)),      # ts  (streamed)
            pl.BlockSpec((F_in, U), lambda i: (0, 0)),        # W_bb_x (resident)
            pl.BlockSpec((H, U), lambda i: (0, 0)),           # W_bb_h (resident)
            pl.BlockSpec((1, U), lambda i: (0, 0)),           # b_bb
            pl.BlockSpec((U, H4), lambda i: (0, 0)),          # W_heads (resident)
            pl.BlockSpec((1, H4), lambda i: (0, 0)),          # b_heads
        ],
        out_specs=pl.BlockSpec((tile_b, H), lambda i: (i, 0)),
        compiler_params=pltpu.CompilerParams(
            # batch tiles are independent -> megacore-shardable on v7x
            dimension_semantics=("parallel",),
            # safely within v5e/v6e (128 MiB) and v7x (64 MiB) physical VMEM
            vmem_limit_bytes=32 * 1024 * 1024,
        ),
    )(x, hx, ts2, wx, whr, bbb, whd, bhd)
    return h_new, h_new


def _xavier_uniform(key, shape, dtype=jnp.float32):
    fan_in, fan_out = shape[0], shape[1]
    limit = jnp.sqrt(6.0 / (fan_in + fan_out))
    return jax.random.uniform(key, shape, dtype, minval=-limit, maxval=limit)


def init_params(key, input_size, hidden_size, backbone_units):
    """Per-layer params matching the PyTorch module's init_weights()
    (xavier_uniform for 2-D weights, zeros for biases)."""
    cat = input_size + hidden_size
    ks = jax.random.split(key, 5)
    z = lambda n: jnp.zeros((1, n), jnp.float32)
    return {
        "wbb": _xavier_uniform(ks[0], (cat, backbone_units)),
        "bbb": z(backbone_units),
        "w1": _xavier_uniform(ks[1], (backbone_units, hidden_size)),
        "b1": z(hidden_size),
        "w2": _xavier_uniform(ks[2], (backbone_units, hidden_size)),
        "b2": z(hidden_size),
        "wa": _xavier_uniform(ks[3], (backbone_units, hidden_size)),
        "ba": z(hidden_size),
        "wb": _xavier_uniform(ks[4], (backbone_units, hidden_size)),
        "bb": z(hidden_size),
    }


def fuse_params(p, input_size, weight_dtype=jnp.float32):
    """Split the backbone weight into its x / h halves (so the kernel never
    needs a cat([x, hx]) HBM round-trip) and fuse the four head projections
    into one [U, 4H] weight / [1, 4H] bias.  Set weight_dtype=jnp.bfloat16 on
    v6e/v7x for 2x smaller resident weights + the bf16 MXU path (fp32
    accumulation preserved in-kernel)."""
    return {
        "w_bb_x": p["wbb"][:input_size].astype(weight_dtype),
        "w_bb_h": p["wbb"][input_size:].astype(weight_dtype),
        "b_bb": p["bbb"].astype(jnp.float32),
        "w_heads": jnp.concatenate(
            [p["w1"], p["w2"], p["wa"], p["wb"]], axis=1).astype(weight_dtype),
        "b_heads": jnp.concatenate(
            [p["b1"], p["b2"], p["ba"], p["bb"]], axis=1).astype(jnp.float32),
    }


def _reference(x, hx, ts, p):
    xc = jnp.concatenate([x, hx], axis=1)
    z = 1.7159 * jnp.tanh(0.666 * (xc @ p["wbb"] + p["bbb"]))
    ff1 = jnp.tanh(z @ p["w1"] + p["b1"])
    ff2 = jnp.tanh(z @ p["w2"] + p["b2"])
    ta = z @ p["wa"] + p["ba"]
    tb = z @ p["wb"] + p["bb"]
    ti = jax.nn.sigmoid(ta * ts.reshape(-1, 1) + tb)
    return ff1 * (1.0 - ti) + ti * ff2


if __name__ == "__main__":
    B, F_IN, H, U = 8, 16, 32, 128

    key = jax.random.PRNGKey(0)
    k_x, k_h, k_t, k_p = jax.random.split(key, 4)
    x = jax.random.normal(k_x, (B, F_IN), jnp.float32)
    hx = jax.random.normal(k_h, (B, H), jnp.float32)
    ts = jax.random.uniform(k_t, (B,), jnp.float32, minval=0.1, maxval=1.0)

    params = init_params(k_p, F_IN, H, U)
    fused = fuse_params(params, F_IN, weight_dtype=jnp.float32)  # fp32 for 1e-5 check

    h_new, h_out = efficient_cfc_cell(x, hx, ts, fused)
    jax.block_until_ready(h_new)

    ref = _reference(x, hx, ts, params)
    assert h_new.shape == (B, H)
    assert jnp.allclose(h_new, ref, atol=1e-5, rtol=1e-5)
    assert jnp.array_equal(h_new, h_out)

    print("KERNEL_OK")
</pallas_src>

<mosaic_0001>
module attributes {stable_mosaic.version = 11 : i64} {
  func.func @_cfc_kernel(%arg0: i32, %arg1: memref<8x16xf32, #tpu.memory_space<vmem>>, %arg2: memref<8x32xf32, #tpu.memory_space<vmem>>, %arg3: memref<8x1xf32, #tpu.memory_space<vmem>>, %arg4: memref<16x128xf32, #tpu.memory_space<vmem>>, %arg5: memref<32x128xf32, #tpu.memory_space<vmem>>, %arg6: memref<1x128xf32, #tpu.memory_space<vmem>>, %arg7: memref<128x128xf32, #tpu.memory_space<vmem>>, %arg8: memref<1x128xf32, #tpu.memory_space<vmem>>, %arg9: memref<8x32xf32, #tpu.memory_space<vmem>>) attributes {dimension_semantics = [#tpu.dimension_semantics<parallel>], iteration_bounds = array<i64: 1>, scalar_prefetch = 0 : i64, scratch_operands = 0 : i64, tpu.core_type = #tpu.core_type<tc>, window_params = [{transform_indices = @transform_0, window_bounds = array<i64: 8, 16>}, {transform_indices = @transform_1, window_bounds = array<i64: 8, 32>}, {transform_indices = @transform_2, window_bounds = array<i64: 8, 1>}, {pipeline_mode = #tpu.pipeline_mode<synchronous>, transform_indices = @transform_3, window_bounds = array<i64: 16, 128>}, {pipeline_mode = #tpu.pipeline_mode<synchronous>, transform_indices = @transform_4, window_bounds = array<i64: 32, 128>}, {pipeline_mode = #tpu.pipeline_mode<synchronous>, transform_indices = @transform_5, window_bounds = array<i64: 1, 128>}, {pipeline_mode = #tpu.pipeline_mode<synchronous>, transform_indices = @transform_6, window_bounds = array<i64: 128, 128>}, {pipeline_mode = #tpu.pipeline_mode<synchronous>, transform_indices = @transform_7, window_bounds = array<i64: 1, 128>}, {transform_indices = @transform_8, window_bounds = array<i64: 8, 32>}]} {
    %c0 = arith.constant 0 : index
    %c0_0 = arith.constant 0 : index
    %0 = vector.load %arg1[%c0, %c0_0] : memref<8x16xf32, #tpu.memory_space<vmem>>, vector<8x16xf32>
    %c0_1 = arith.constant 0 : index
    %c0_2 = arith.constant 0 : index
    %1 = vector.load %arg4[%c0_1, %c0_2] : memref<16x128xf32, #tpu.memory_space<vmem>>, vector<16x128xf32>
    %cst = arith.constant dense<0.000000e+00> : vector<8x128xf32>
    %2 = tpu.matmul %0, %1, %cst {dimension_numbers = #tpu.dot_dimension_numbers<[1], [0], [0], [1], [0, 0, 1, 1], [], []>} : vector<8x16xf32>, vector<16x128xf32>, vector<8x128xf32> -> vector<8x128xf32>
    %c0_3 = arith.constant 0 : index
    %c0_4 = arith.constant 0 : index
    %3 = vector.load %arg2[%c0_3, %c0_4] : memref<8x32xf32, #tpu.memory_space<vmem>>, vector<8x32xf32>
    %c0_5 = arith.constant 0 : index
    %c0_6 = arith.constant 0 : index
    %4 = vector.load %arg5[%c0_5, %c0_6] : memref<32x128xf32, #tpu.memory_space<vmem>>, vector<32x128xf32>
    %cst_7 = arith.constant dense<0.000000e+00> : vector<8x128xf32>
    %5 = tpu.matmul %3, %4, %cst_7 {dimension_numbers = #tpu.dot_dimension_numbers<[1], [0], [0], [1], [0, 0, 1, 1], [], []>} : vector<8x32xf32>, vector<32x128xf32>, vector<8x128xf32> -> vector<8x128xf32>
    %6 = arith.addf %2, %5 : vector<8x128xf32>
    %c0_8 = arith.constant 0 : index
    %c0_9 = arith.constant 0 : index
    %7 = vector.load %arg6[%c0_8, %c0_9] : memref<1x128xf32, #tpu.memory_space<vmem>>, vector<1x128xf32>
    %8 = vector.broadcast %7 : vector<1x128xf32> to vector<8x128xf32>
    %9 = arith.addf %6, %8 : vector<8x128xf32>
    %cst_10 = arith.constant 6.660000e-01 : f32
    %10 = vector.broadcast %cst_10 : f32 to vector<8x128xf32>
    %11 = arith.mulf %10, %9 : vector<8x128xf32>
    %12 = math.tanh %11 : vector<8x128xf32>
    %cst_11 = arith.constant 1.715900e+00 : f32
    %13 = vector.broadcast %cst_11 : f32 to vector<8x128xf32>
    %14 = arith.mulf %13, %12 : vector<8x128xf32>
    %c0_12 = arith.constant 0 : index
    %c0_13 = arith.constant 0 : index
    %15 = vector.load %arg7[%c0_12, %c0_13] : memref<128x128xf32, #tpu.memory_space<vmem>>, vector<128x128xf32>
    %cst_14 = arith.constant dense<0.000000e+00> : vector<8x128xf32>
    %16 = tpu.matmul %14, %15, %cst_14 {dimension_numbers = #tpu.dot_dimension_numbers<[1], [0], [0], [1], [0, 0, 1, 1], [], []>} : vector<8x128xf32>, vector<128x128xf32>, vector<8x128xf32> -> vector<8x128xf32>
    %c0_15 = arith.constant 0 : index
    %c0_16 = arith.constant 0 : index
    %17 = vector.load %arg8[%c0_15, %c0_16] : memref<1x128xf32, #tpu.memory_space<vmem>>, vector<1x128xf32>
    %18 = vector.broadcast %17 : vector<1x128xf32> to vector<8x128xf32>
    %19 = arith.addf %16, %18 : vector<8x128xf32>
    %20 = vector.extract_strided_slice %19 {offsets = [0, 0], sizes = [8, 32], strides = [1, 1]} : vector<8x128xf32> to vector<8x32xf32>
    %21 = vector.extract_strided_slice %19 {offsets = [0, 32], sizes = [8, 32], strides = [1, 1]} : vector<8x128xf32> to vector<8x32xf32>
    %22 = vector.extract_strided_slice %19 {offsets = [0, 64], sizes = [8, 32], strides = [1, 1]} : vector<8x128xf32> to vector<8x32xf32>
    %23 = vector.extract_strided_slice %19 {offsets = [0, 96], sizes = [8, 32], strides = [1, 1]} : vector<8x128xf32> to vector<8x32xf32>
    %24 = math.tanh %20 : vector<8x32xf32>
    %25 = math.tanh %21 : vector<8x32xf32>
    %c0_17 = arith.constant 0 : index
    %c0_18 = arith.constant 0 : index
    %26 = vector.load %arg3[%c0_17, %c0_18] : memref<8x1xf32, #tpu.memory_space<vmem>>, vector<8x1xf32>
    %27 = vector.broadcast %26 : vector<8x1xf32> to vector<8x32xf32>
    %28 = arith.mulf %22, %27 : vector<8x32xf32>
    %29 = arith.addf %28, %23 : vector<8x32xf32>
    %30 = arith.negf %29 : vector<8x32xf32>
    %31 = math.exp %30 : vector<8x32xf32>
    %cst_19 = arith.constant 1.000000e+00 : f32
    %32 = vector.broadcast %cst_19 : f32 to vector<8x32xf32>
    %33 = arith.addf %32, %31 : vector<8x32xf32>
    %34 = arith.divf %32, %33 : vector<8x32xf32>
    %35 = arith.subf %25, %24 : vector<8x32xf32>
    %36 = arith.mulf %34, %35 : vector<8x32xf32>
    %37 = arith.addf %24, %36 : vector<8x32xf32>
    %c0_20 = arith.constant 0 : index
    %c0_21 = arith.constant 0 : index
    %38 = vector.load %arg9[%c0_20, %c0_21] : memref<8x32xf32, #tpu.memory_space<vmem>>, vector<8x32xf32>
    tpu.vector_store %arg9[%c0_20, %c0_21], %37 {strides = array<i32>} : memref<8x32xf32, #tpu.memory_space<vmem>>, vector<8x32xf32>,
    return
  }
  func.func @transform_0(%arg0: i32) -> (i32, i32) {
    %c0_i32 = arith.constant 0 : i32
    %c0_i32_0 = arith.constant 0 : i32
    return %arg0, %c0_i32 : i32, i32
  }
  func.func @transform_1(%arg0: i32) -> (i32, i32) {
    %c0_i32 = arith.constant 0 : i32
    %c0_i32_0 = arith.constant 0 : i32
    return %arg0, %c0_i32 : i32, i32
  }
  func.func @transform_2(%arg0: i32) -> (i32, i32) {
    %c0_i32 = arith.constant 0 : i32
    %c0_i32_0 = arith.constant 0 : i32
    return %arg0, %c0_i32 : i32, i32
  }
  func.func @transform_3(%arg0: i32) -> (i32, i32) {
    %c0_i32 = arith.constant 0 : i32
    %c0_i32_0 = arith.constant 0 : i32
    %c0_i32_1 = arith.constant 0 : i32
    return %c0_i32, %c0_i32_0 : i32, i32
  }
  func.func @transform_4(%arg0: i32) -> (i32, i32) {
    %c0_i32 = arith.constant 0 : i32
    %c0_i32_0 = arith.constant 0 : i32
    %c0_i32_1 = arith.constant 0 : i32
    return %c0_i32, %c0_i32_0 : i32, i32
  }
  func.func @transform_5(%arg0: i32) -> (i32, i32) {
    %c0_i32 = arith.constant 0 : i32
    %c0_i32_0 = arith.constant 0 : i32
    %c0_i32_1 = arith.constant 0 : i32
    return %c0_i32, %c0_i32_0 : i32, i32
  }
  func.func @transform_6(%arg0: i32) -> (i32, i32) {
    %c0_i32 = arith.constant 0 : i32
    %c0_i32_0 = arith.constant 0 : i32
    %c0_i32_1 = arith.constant 0 : i32
    return %c0_i32, %c0_i32_0 : i32, i32
  }
  func.func @transform_7(%arg0: i32) -> (i32, i32) {
    %c0_i32 = arith.constant 0 : i32
    %c0_i32_0 = arith.constant 0 : i32
    %c0_i32_1 = arith.constant 0 : i32
    return %c0_i32, %c0_i32_0 : i32, i32
  }
  func.func @transform_8(%arg0: i32) -> (i32, i32) {
    %c0_i32 = arith.constant 0 : i32
    %c0_i32_0 = arith.constant 0 : i32
    return %arg0, %c0_i32 : i32, i32
  }
}

</mosaic_0001>

<bundles_post_ra>
// kernel: tpu_custom_call.1
= control target key start
LH: loop header
LB: loop body
LE: loop exit
PB: predicated region body
PF: predicated region fallthrough
CT: control target
= control target key end

     0   :  { %13 = vsyncpa [#allocation3], 0  ;;  %s500_s0 = inlined_call_operand.vmem [shape: f32[8,16], index: 0, kind: input, shape index: {}]   ;;  %s501_s1 = inlined_call_operand.hbm [shape: f32[8,32], index: 1, kind: input, shape index: {}]   ;;  %s502_s2 = inlined_call_operand.vmem [shape: f32[8,1], index: 2, kind: input, shape index: {}]   ;;  %s503_s3 = inlined_call_operand.hbm [shape: f32[16,128], index: 3, kind: input, shape index: {}]   ;;  %s504_s4 = inlined_call_operand.hbm [shape: f32[32,128], index: 4, kind: input, shape index: {}]   ;;  %s505_s5 = inlined_call_operand.vmem [shape: f32[1,128], index: 5, kind: input, shape index: {}]   ;;  %s506_s6 = inlined_call_operand.hbm [shape: f32[128,128], index: 6, kind: input, shape index: {}]   ;;  %s507_s7 = inlined_call_operand.vmem [shape: f32[1,128], index: 7, kind: input, shape index: {}]   ;;  %s508_s8 = inlined_call_operand.hbm [shape: f32[8,32], index: 8, kind: output, shape index: {}]  }
   0x1   :  { %14 = vsyncpa [#allocation6], 0 }
   0x2   :  { %15 = vsyncpa [#allocation9], 0  ;;  %s36_s29 = sshll.u32 %s503_s3, 4  ;;  %s37_s29 = int_to_ptr.hbm [resolvable:$true] %s36_s29 }
   0x3   :  { %16 = vsyncpa [#allocation4], 0  ;;  %s415_s30 = smov [#allocation5]   ;;  %s24_s12 = sshll.u32 %s501_s1, 4  ;;  %s25_s12 = int_to_ptr.hbm [resolvable:$true] %s24_s12 }
   0x4   :  { %s38_s9 = sshll.u32 %s415_s30, 4  ;;  %s416_s13 = smov 128   ;;  %s39_s9 = int_to_ptr.vmem [resolvable:$true] %s38_s9 }
   0x5   :  { %s417_s14 = smov 8   ;;  %s418_s15 = smov [#allocation2]  }
   0x6   :  { %44 = dma.hbm_to_vmem [thread:$0]  %s37_s29, 256, %s39_s9, [#allocation6], %s416_s13, %s416_s13, %s417_s14  }
   0x7   :  { %s26_s16 = sshll.u32 %s418_s15, 4  ;;  %s49_s19 = sshll.u32 %s504_s4, 4  ;;  %s27_s16 = int_to_ptr.vmem [resolvable:$true] %s26_s16  ;;  %s50_s19 = int_to_ptr.hbm [resolvable:$true] %s49_s19 }
   0x8   :  { %29 = dma.hbm_to_vmem [thread:$0]  %s25_s12, 128, %s27_s16, [#allocation3]  }
   0x9   :  { %s64_s21 = sshll.u32 %s506_s6, 4  ;;  %s419_s22 = smov [#allocation7]   ;;  %s65_s21 = int_to_ptr.hbm [resolvable:$true] %s64_s21 }
   0xa   :  { %s51_s23 = sshll.u32 %s419_s22, 4  ;;  %s420_s1 = smov [#allocation8]   ;;  %s52_s23 = int_to_ptr.vmem [resolvable:$true] %s51_s23 }
   0xb   :  { %57 = dma.hbm_to_vmem [thread:$0]  %s50_s19, 512, %s52_s23, [#allocation6], %s416_s13, %s416_s13, %s417_s14  }
   0xc   :  { %s66_s24 = sshll.u32 %s420_s1, 4  ;;  %s67_s24 = int_to_ptr.vmem [resolvable:$true] %s66_s24 }
   0xd   :  { %72 = dma.hbm_to_vmem [thread:$0]  %s65_s21, 2048, %s67_s24, [#allocation9], %s416_s13, %s416_s13, %s417_s14  }
   0xe   :  { %407 = dma.done.wait [#allocation3], 128  }
   0xf   :  { %408 = vsyncadd [#allocation3], 4294967168 }
  0x10   :  { %409 = dma.done.wait [#allocation6], 768  }
  0x11   :  { %410 = vsyncadd [#allocation6], 4294966528 }
  0x12   :  { %411 = dma.done.wait [#allocation9], 2048  }
  0x13   :  { %412 = vsyncadd [#allocation9], 4294965248  ;;  %v98_v0 = vld [vmem:[#allocation7 + $0x18] sm:$0xff]  ;;  %v97_v1 = vld [vmem:[#allocation7 + $0x10] sm:$0xff]  ;;  %vm123_vm0 = vcmask 130048   ;;  %vm99_vm1 = vcmask 261120  }
  0x14   :  { %115 = vmatpush.msra.mxu0 %v98_v0  ;;  %v93_v2 = vld [vmem:[#allocation5 + $0x8] sm:$0xff]  ;;  %v92_v3 = vld [vmem:[#allocation5] sm:$0xff]  ;;  %v96_v4 = vld [vmem:[#allocation7 + $0x8] sm:$0xff]  ;;  %v421_v32 = vmov 0   ;;  %s422_s28 = smov 96   ;;  %s250_s12 = sshll.u32 %s508_s8, 4  ;;  %s251_s12 = int_to_ptr.hbm [resolvable:$true] %s250_s12 }
  0x15   :  { %141 = vmatpush.msra.mxu1 %v93_v2  ;;  %v91_v5 = vld [vmem:[%s500_s0] sm:$0xff]  ;;  %v170_v6 = vld [vmem:[#allocation8 + $0x78] sm:$0xff]  ;;  %v169_v7 = vld [vmem:[#allocation8 + $0x70] sm:$0xff]  ;;  %276 = vset.pattern.permute.xlu0 %v421_v32 }
  0x16   :  { %116 = vmatpush.msra.mxu0 %v97_v1  ;;  %175 = vmatpush.msra.mxu2 %v170_v6  ;;  %v95_v8 = vld [vmem:[#allocation7] sm:$0xff]  ;;  %v94_v9 = vld [vmem:[#allocation2] sm:$0xff]  ;;  %v166_v12 = vld [vmem:[#allocation8 + $0x58] sm:$0xff] }
  0x17   :  { %142 = vmatpush.msra.mxu1 %v92_v3  ;;  %v168_v10 = vld [vmem:[#allocation8 + $0x68] sm:$0xff]  ;;  %v167_v11 = vld [vmem:[#allocation8 + $0x60] sm:$0xff]  ;;  %v165_v13 = vld [vmem:[#allocation8 + $0x50] sm:$0xff] }
  0x18   :  { %117 = vmatpush.msra.mxu0 %v96_v4  ;;  %263 = vmatmul.msk.f32.vlgmr.msra.gmra.mxu1 %vm123_vm0, %v91_v5  ;;  %v164_v14 = vld [vmem:[#allocation8 + $0x48] sm:$0xff]  ;;  %v163_v15 = vld [vmem:[#allocation8 + $0x40] sm:$0xff]  ;;  %v162_v16 = vld [vmem:[#allocation8 + $0x38] sm:$0xff] }
  0x19   :  { %176 = vmatpush.msra.mxu2 %v169_v7  ;;  %v161_v17 = vld [vmem:[#allocation8 + $0x30] sm:$0xff]  ;;  %v160_v18 = vld [vmem:[#allocation8 + $0x28] sm:$0xff]  ;;  %v159_v19 = vld [vmem:[#allocation8 + $0x20] sm:$0xff] }
  0x1a   :  { %118 = vmatpush.msra.mxu0 %v95_v8  ;;  %v158_v20 = vld [vmem:[#allocation8 + $0x18] sm:$0xff]  ;;  %v157_v21 = vld [vmem:[#allocation8 + $0x10] sm:$0xff]  ;;  %v156_v22 = vld [vmem:[#allocation8 + $0x8] sm:$0xff] }
  0x1b   :  { %262 = vmatmul.msk.f32.vlgmr.msra.gmra.mxu0 %vm99_vm1, %v94_v9  ;;  %177 = vmatpush.msra.mxu2 %v168_v10  ;;  %v155_v23 = vld [vmem:[#allocation8] sm:$0xff]  ;;  %v277_v25 = vld [vmem:[%s505_s5] ss:$0 sm:$0xff]  ;;  %s423_s5 = smov 32  }
  0x1c   :  { %v278_v33 = vld [vmem:[%s507_s7] ss:$0 sm:$0xff]  ;;  %s425_s7 = smov [#allocation10]  }
  0x1d   :  { %178 = vmatpush.msra.mxu2 %v167_v11  ;;  %v196_v37 = vld [vmem:[%s502_s2] sm:$0xff]  ;;  %s424_s2 = smov 64   ;;  %s248_s9 = sshll.u32 %s425_s7, 4  ;;  %s249_s9 = int_to_ptr.vmem [resolvable:$true] %s248_s9 }
  0x1f   :  { %179 = vmatpush.msra.mxu2 %v166_v12 }
  0x21   :  { %180 = vmatpush.msra.mxu2 %v165_v13 }
  0x23   :  { %181 = vmatpush.msra.mxu2 %v164_v14 }
  0x25   :  { %182 = vmatpush.msra.mxu2 %v163_v15 }
  0x27   :  { %183 = vmatpush.msra.mxu2 %v162_v16 }
  0x29   :  { %184 = vmatpush.msra.mxu2 %v161_v17 }
  0x2b   :  { %185 = vmatpush.msra.mxu2 %v160_v18 }
  0x2d   :  { %186 = vmatpush.msra.mxu2 %v159_v19 }
  0x2f   :  { %187 = vmatpush.msra.mxu2 %v158_v20 }
  0x31   :  { %188 = vmatpush.msra.mxu2 %v157_v21 }
  0x33   :  { %189 = vmatpush.msra.mxu2 %v156_v22 }
  0x35   :  { %190 = vmatpush.msra.mxu2 %v155_v23 }
  0x95   :  { %v144_v24 = vpop.f32.mrf.mxu1 }
  0x98   :  { %v120_v26 = vpop.f32.mrf.mxu0 }
  0x99   :  { %v145_v27 = vadd.f32 %v144_v24, %v120_v26 }
  0x9b   :  { %v151_v28 = vadd.f32 %v277_v25, %v145_v27 }
  0x9d   :  { %v152_v29 = vmul.f32 0.666, %v151_v28 }
  0x9f   :  { %279 = vtanh.f32 %v152_v29 }
  0xa5   :  { %v280_v30 = vpop.eup %279 }
  0xa6   :  { %v154_v31 = vmul.f32 1.7159, %v280_v30 }
  0xa8   :  { %191 = vmatmul.f32.vlgmr.msra.gmra.mxu2 %v154_v31 }
 0x12b   :  { %v192_v34 = vpop.f32.mrf.mxu2 }
 0x12c   :  { %v193_v35 = vadd.f32 %v278_v33, %v192_v34 }
 0x12e   :  { %281 = vtanh.f32 %v193_v35  ;;  %204 = vrot.lane.b32.xlu1 %v193_v35, %s422_s28 }
 0x134   :  { %v282_v36 = vpop.eup %281 }
 0x135   :  { %228 = vrot.lane.b32.xlu0 %v282_v36, %s423_s5 }
 0x13d   :  { %199 = vperm.xlu0 %276, %v196_v37  }
 0x1a0   :  { %v205_v42 = vpop.permute.xlu1 %204 }
 0x1a7   :  { %v229_v38 = vpop.permute.xlu0 %228 }
 0x1a8   :  { %v231_v39 = vsub.f32 %v282_v36, %v229_v38 }
 0x1aa   :  { %233 = vrot.lane.b32.xlu1 %v231_v39, %s423_s5 }
 0x1af   :  { %v200_v40 = vpop.permute.xlu0 %199 }
 0x1b0   :  { %v202_v41 = vmul.f32 %v200_v40, %v193_v35 }
 0x1b2   :  { %v207_v43 = vadd.f32 %v205_v42, %v202_v41 }
 0x1b4   :  { %v264_v44 = vmul.f32 -1.442695, %v207_v43 }
 0x1b6   :  { %283 = vpow2.f32 %v264_v44 }
 0x1bc   :  { %v284_v45 = vpop.eup %283 }
 0x1bd   :  { %v211_v46 = vadd.f32 1.0, %v284_v45 }
 0x1bf   :  { %285 = vrcp.f32 %v211_v46  ;;  %v223_v52 = vand.u32 2147483648, %v211_v46  ;;  %vm217_vm3 = vweird.f32 %v211_v46  ;;  %v221_v53 = vand.u32 2147483647, %v211_v46 }
 0x1c1   :  { %v224_v55 = vor.u32 1.1754944e-38, %v223_v52  ;;  %vm222_vm5 = vcmp.eq.f32.partialorder %v221_v53, 8.507059e+37 }
 0x1c5   :  { %v286_v47 = vpop.eup %285 }
 0x1c6   :  { %v213_v48 = vmul.f32 %v286_v47, %v211_v46  ;;  %vm218_vm2 = vweird.f32 %v286_v47 }
 0x1c7   :  { %vm219_vm4 = vmor %vm217_vm3, %vm218_vm2 }
 0x1c8   :  { %v214_v49 = vsub.f32 1.0, %v213_v48 }
 0x1ca   :  { %v215_v50 = vmul.f32 %v286_v47, %v214_v49 }
 0x1cc   :  { %v216_v51 = vadd.f32 %v286_v47, %v215_v50 }
 0x1ce   :  { %v220_v54 = vsel %vm219_vm4, %v286_v47, %v216_v51 }
 0x1cf   :  { %v225_v57 = vsel %vm222_vm5, %v224_v55, %v220_v54 }
 0x21c   :  { %v234_v56 = vpop.permute.xlu1 %233 }
 0x21d   :  { %v236_v58 = vmul.f32 %v234_v56, %v225_v57 }
 0x21f   :  { %238 = vrot.lane.b32.xlu2 %v236_v58, %s424_s2 }
 0x279   :  { %v239_v59 = vpop.permute.xlu2 %238 }
 0x27a   :  { %v241_v60 = vadd.f32 %v282_v36, %v239_v59 }
 0x27c   :  { %242 = vst.msk [vmem:[#allocation10] sm:$0xff] %vm99_vm1, %v241_v60 }
 0x27d   :  { %253 = dma.vmem_to_hbm [thread:$0]  %s249_s9, 128, %s251_s12, [#allocation4]  }
 0x27e   :  { %413 = dma.done.wait [#allocation4], 128  }
 0x27f   :  { %414 = vsyncadd [#allocation4], 4294967168 }
 0x280   :  { %258 = vsyncpa [#allocation3], 1 }
 0x281   :  { %259 = vsyncpa [#allocation6], 1 }
 0x282   :  { %260 = vsyncpa [#allocation9], 1 }
 0x283   :  { %261 = vsyncpa [#allocation4], 1 }

</bundles_post_ra>
